<compile_context>
chip_gen: v7x
topology: tpu7x:2x2x1
jax: 0.10.0
libtpu: 0.0.40
codegen_flags: <defaults>
</compile_context>

<pallas_src>
import functools

import jax
import jax.numpy as jnp
from jax.experimental import pallas as pl
from jax.experimental.pallas import tpu as pltpu


def _round_up(x, m):
    return (x + m - 1) // m * m


def text_encoder_kernel(x_ref, w_ref, b_ref, wq_ref, bq_ref, qv_ref, out_ref,
                        *, seq_len, padded_seq, window_size):
    # x_ref:  (TB, Np + 2*pad, E)  bf16 padded embedded text
    # w_ref:  (W, E, CP)           bf16 per-tap conv weights (channels padded to CP)
    # b_ref:  (1, CP)              f32 conv bias (padded)
    # wq_ref: (CP, QP)             bf16 additive-attention projection weight (padded)
    # bq_ref: (1, QP)              f32 projection bias (padded)
    # qv_ref: (1, QP)              f32 attention query vector, row layout (padded)
    # out_ref:(TB, CP)             f32 final text vectors (lane-dense, padded chans)
    tb = x_ref.shape[0]
    e_dim = x_ref.shape[2]
    cp = w_ref.shape[2]
    np_ = padded_seq

    x = x_ref[...]                                               # bf16 (TB, n_tot, E)

    # --- Conv2d(1, C, (W, E)) as W accumulated MXU matmuls (no lane concat) ---
    acc = None
    for w in range(window_size):
        tap = x[:, w:w + np_, :].reshape(tb * np_, e_dim)        # bf16 (TB*Np, E)
        d = jnp.dot(tap, w_ref[w], preferred_element_type=jnp.float32)
        acc = d if acc is None else acc + d                      # f32 (TB*Np, CP)
    conv = acc + b_ref[...]                                      # f32 (TB*Np, CP)

    # --- ReLU (f32 VPU) ---
    h = jnp.maximum(conv, 0.0)                                   # f32 (TB*Np, CP)

    # --- Additive attention ---
    proj = jnp.tanh(
        jnp.dot(h.astype(wq_ref.dtype), wq_ref[...],
                preferred_element_type=jnp.float32) + bq_ref[...])      # (TB*Np, QP)
    scores = jnp.sum(proj * qv_ref[...], axis=-1, keepdims=True)        # (TB*Np, 1)
    scores = scores.reshape(tb, np_, 1)                                 # (TB, Np, 1)

    # Mask padded sequence positions so they get zero attention weight.
    pos = jax.lax.broadcasted_iota(jnp.int32, (tb, np_, 1), 1)
    scores = jnp.where(pos < seq_len, scores, -1e30)

    m = jnp.max(scores, axis=1, keepdims=True)                          # (TB, 1, 1)
    e = jnp.exp(scores - m)                                             # (TB, Np, 1)
    denom = jnp.sum(e, axis=1, keepdims=True)                           # (TB, 1, 1)
    alpha = e / denom                                                   # exact

    h3 = h.reshape(tb, np_, cp)                                         # (TB, Np, CP)
    out = jnp.sum(alpha * h3, axis=1)                                   # (TB, CP)
    out_ref[...] = out.astype(out_ref.dtype)


def text_encoder_forward(text, embedding_table, conv_w, conv_b, wq, bq, qvec,
                         *, window_size, target_m=256, max_block_b=128):
    """text: (B, N) int32 token ids. Returns (B, C) float32.

    conv_w is stored as (W, E, C)  (== PyTorch Conv2d weight.squeeze(1).permute(2,3,0)).
    """
    B, N = text.shape
    E = embedding_table.shape[1]
    C = conv_w.shape[2]
    Q = wq.shape[1]
    assert window_size % 2 == 1, "'same' conv padding requires odd window_size"

    CP = _round_up(C, 128)          # lane-dense channel dim
    QP = _round_up(Q, 128)          # lane-dense query dim
    Np = _round_up(N, 8)            # sublane-aligned sequence length
    pad = (window_size - 1) // 2
    n_tot = Np + 2 * pad

    # --- glue: embedding lookup (emitted in bf16) + zero padding ---
    # Front pad = conv 'same' padding; back pad = conv padding + seq alignment.
    emb = jnp.take(embedding_table, text, axis=0).astype(jnp.bfloat16)   # (B, N, E)
    emb_p = jnp.pad(emb, ((0, 0), (pad, (Np - N) + pad), (0, 0)))        # (B, n_tot, E)

    # --- per-step batch TB: target MXU M-dim (TB*Np) >= target_m, multiple of 8,
    #     capped by a conservative VMEM budget (safe on v7x 64 MiB / v5e 16 MiB scoped).
    tb = _round_up(-(-target_m // Np), 8)
    tb = min(tb, max_block_b)
    per_b_bytes = (2 * (n_tot * E * 2)        # double-buffered bf16 input block
                   + 2 * (Np * CP * 4)        # conv accumulator + h (f32)
                   + (Np * QP * 4)            # proj (f32)
                   + 3 * (Np * CP * 4))       # temporaries headroom
    vmem_budget = 20 * 1024 * 1024
    while tb > 8 and tb * per_b_bytes > vmem_budget:
        tb -= 8
    B_pad8 = _round_up(B, 8)
    TB = min(tb, B_pad8)
    B_pad = _round_up(B, TB)
    if B_pad != B:
        emb_p = jnp.pad(emb_p, ((0, B_pad - B), (0, 0), (0, 0)))
    # Note(v7x): with large B this yields >=2 grid steps so the 'parallel' axis can
    # shard across both TensorCores; at B <= 8 a single step is unavoidable.

    # --- host-side weight prep (layout plumbing, done once) ---
    w_taps = jnp.pad(conv_w.astype(jnp.bfloat16),
                     ((0, 0), (0, 0), (0, CP - C)))                      # (W, E, CP)
    b_p = jnp.pad(conv_b.astype(jnp.float32), ((0, 0), (0, CP - C)))     # (1, CP)
    wq_p = jnp.pad(wq.astype(jnp.bfloat16),
                   ((0, CP - C), (0, QP - Q)))                           # (CP, QP)
    bq_p = jnp.pad(bq.astype(jnp.float32), ((0, 0), (0, QP - Q)))        # (1, QP)
    qv_p = jnp.pad(qvec.astype(jnp.float32).reshape(1, Q),
                   ((0, 0), (0, QP - Q)))                                # (1, QP)

    kernel = functools.partial(text_encoder_kernel,
                               seq_len=N, padded_seq=Np,
                               window_size=window_size)

    out = pl.pallas_call(
        kernel,
        out_shape=jax.ShapeDtypeStruct((B_pad, CP), jnp.float32),
        grid=(B_pad // TB,),
        in_specs=[
            pl.BlockSpec((TB, n_tot, E), lambda b: (b, 0, 0)),
            pl.BlockSpec((window_size, E, CP), lambda b: (0, 0, 0)),
            pl.BlockSpec((1, CP), lambda b: (0, 0)),
            pl.BlockSpec((CP, QP), lambda b: (0, 0)),
            pl.BlockSpec((1, QP), lambda b: (0, 0)),
            pl.BlockSpec((1, QP), lambda b: (0, 0)),
        ],
        out_specs=pl.BlockSpec((TB, CP), lambda b: (b, 0)),
        compiler_params=pltpu.CompilerParams(
            dimension_semantics=("parallel",),
            vmem_limit_bytes=32 * 1024 * 1024),
    )(emb_p, w_taps, b_p, wq_p, bq_p, qv_p)

    return out[:B, :C]


def text_encoder_reference(text, embedding_table, conv_w, conv_b, wq, bq, qvec,
                           *, window_size):
    """Pure-JAX f32 reference mirroring the PyTorch module (dropout = identity)."""
    emb = jnp.take(embedding_table, text, axis=0)              # (B, N, E)
    pad = (window_size - 1) // 2
    emb_p = jnp.pad(emb, ((0, 0), (pad, pad), (0, 0)))
    N = text.shape[1]
    acc = jnp.zeros((text.shape[0], N, conv_w.shape[2]), jnp.float32)
    for w in range(window_size):
        acc = acc + jnp.einsum('bne,ec->bnc', emb_p[:, w:w + N, :], conv_w[w])
    conv = acc + conv_b[None, :, :]
    h = jnp.maximum(conv, 0.0)                                 # (B, N, C)
    proj = jnp.tanh(jnp.einsum('bnc,cq->bnq', h, wq) + bq[None, :, :])
    scores = jnp.einsum('bnq,qo->bno', proj, qvec)[..., 0]     # (B, N)
    alpha = jax.nn.softmax(scores, axis=1)                     # (B, N)
    return jnp.einsum('bn,bnc->bc', alpha, h)                  # (B, C)


if __name__ == "__main__":
    # Small, module-consistent shapes.
    VOCAB = 50
    B, N = 2, 8                 # batch, sequence length (num words)
    E = 32                      # word_embedding_dim
    C = 16                      # num_filters
    W = 3                       # window_size (odd -> same-length conv output)
    Q = 16                      # query_vector_dim

    key = jax.random.PRNGKey(0)
    k_emb, k_cw, k_cb, k_wq, k_bq, k_qv, k_txt = jax.random.split(key, 7)

    embedding_table = jax.random.normal(k_emb, (VOCAB, E), jnp.float32) * 0.1
    # PyTorch Conv2d weight is (C, 1, W, E); we store the transposed taps (W, E, C).
    conv_w = jax.random.normal(k_cw, (W, E, C), jnp.float32) * 0.1
    conv_b = jax.random.normal(k_cb, (1, C), jnp.float32) * 0.1
    wq = jax.random.normal(k_wq, (C, Q), jnp.float32) * 0.1
    bq = jax.random.normal(k_bq, (1, Q), jnp.float32) * 0.1
    qvec = jax.random.uniform(k_qv, (Q, 1), jnp.float32, -0.1, 0.1)

    text = jax.random.randint(k_txt, (B, N), 0, VOCAB, dtype=jnp.int32)

    out = text_encoder_forward(text, embedding_table, conv_w, conv_b,
                               wq, bq, qvec, window_size=W)
    out = jax.block_until_ready(out)

    ref = text_encoder_reference(text, embedding_table, conv_w, conv_b,
                                 wq, bq, qvec, window_size=W)
    assert out.shape == (B, C)
    # Tolerance accounts for bf16 matmul operands (f32 accumulation) in the kernel
    # vs. the pure-f32 reference.
    assert jnp.allclose(out, ref, atol=1e-2, rtol=1e-2), (out, ref)
    print("KERNEL_OK")
</pallas_src>

<mosaic_0001>
module attributes {stable_mosaic.version = 11 : i64} {
  func.func @text_encoder_kernel(%arg0: i32, %arg1: memref<8x10x32xbf16, #tpu.memory_space<vmem>>, %arg2: memref<3x32x128xbf16, #tpu.memory_space<vmem>>, %arg3: memref<1x128xf32, #tpu.memory_space<vmem>>, %arg4: memref<128x128xbf16, #tpu.memory_space<vmem>>, %arg5: memref<1x128xf32, #tpu.memory_space<vmem>>, %arg6: memref<1x128xf32, #tpu.memory_space<vmem>>, %arg7: memref<8x128xf32, #tpu.memory_space<vmem>>) attributes {dimension_semantics = [#tpu.dimension_semantics<parallel>], iteration_bounds = array<i64: 1>, scalar_prefetch = 0 : i64, scratch_operands = 0 : i64, tpu.core_type = #tpu.core_type<tc>, window_params = [{transform_indices = @transform_0, window_bounds = array<i64: 8, 10, 32>}, {pipeline_mode = #tpu.pipeline_mode<synchronous>, transform_indices = @transform_1, window_bounds = array<i64: 3, 32, 128>}, {pipeline_mode = #tpu.pipeline_mode<synchronous>, transform_indices = @transform_2, window_bounds = array<i64: 1, 128>}, {pipeline_mode = #tpu.pipeline_mode<synchronous>, transform_indices = @transform_3, window_bounds = array<i64: 128, 128>}, {pipeline_mode = #tpu.pipeline_mode<synchronous>, transform_indices = @transform_4, window_bounds = array<i64: 1, 128>}, {pipeline_mode = #tpu.pipeline_mode<synchronous>, transform_indices = @transform_5, window_bounds = array<i64: 1, 128>}, {transform_indices = @transform_6, window_bounds = array<i64: 8, 128>}]} {
    %c0 = arith.constant 0 : index
    %c0_0 = arith.constant 0 : index
    %c0_1 = arith.constant 0 : index
    %0 = vector.load %arg1[%c0, %c0_0, %c0_1] : memref<8x10x32xbf16, #tpu.memory_space<vmem>>, vector<8x10x32xbf16>
    %1 = vector.extract_strided_slice %0 {offsets = [0, 0, 0], sizes = [8, 8, 32], strides = [1, 1, 1]} : vector<8x10x32xbf16> to vector<8x8x32xbf16>
    %2 = vector.shape_cast %1 : vector<8x8x32xbf16> to vector<64x32xbf16>
    %c0_2 = arith.constant 0 : index
    %c0_3 = arith.constant 0 : index
    %c0_4 = arith.constant 0 : index
    %3 = vector.load %arg2[%c0_2, %c0_3, %c0_4] : memref<3x32x128xbf16, #tpu.memory_space<vmem>>, vector<1x32x128xbf16>
    %4 = vector.shape_cast %3 : vector<1x32x128xbf16> to vector<32x128xbf16>
    %cst = arith.constant dense<0.000000e+00> : vector<64x128xf32>
    %5 = tpu.matmul %2, %4, %cst {dimension_numbers = #tpu.dot_dimension_numbers<[1], [0], [0], [1], [0, 0, 1, 1], [], []>} : vector<64x32xbf16>, vector<32x128xbf16>, vector<64x128xf32> -> vector<64x128xf32>
    %6 = vector.extract_strided_slice %0 {offsets = [0, 1, 0], sizes = [8, 8, 32], strides = [1, 1, 1]} : vector<8x10x32xbf16> to vector<8x8x32xbf16>
    %7 = vector.shape_cast %6 : vector<8x8x32xbf16> to vector<64x32xbf16>
    %c1 = arith.constant 1 : index
    %c0_5 = arith.constant 0 : index
    %c0_6 = arith.constant 0 : index
    %8 = vector.load %arg2[%c1, %c0_5, %c0_6] : memref<3x32x128xbf16, #tpu.memory_space<vmem>>, vector<1x32x128xbf16>
    %9 = vector.shape_cast %8 : vector<1x32x128xbf16> to vector<32x128xbf16>
    %cst_7 = arith.constant dense<0.000000e+00> : vector<64x128xf32>
    %10 = tpu.matmul %7, %9, %cst_7 {dimension_numbers = #tpu.dot_dimension_numbers<[1], [0], [0], [1], [0, 0, 1, 1], [], []>} : vector<64x32xbf16>, vector<32x128xbf16>, vector<64x128xf32> -> vector<64x128xf32>
    %11 = arith.addf %5, %10 : vector<64x128xf32>
    %12 = vector.extract_strided_slice %0 {offsets = [0, 2, 0], sizes = [8, 8, 32], strides = [1, 1, 1]} : vector<8x10x32xbf16> to vector<8x8x32xbf16>
    %13 = vector.shape_cast %12 : vector<8x8x32xbf16> to vector<64x32xbf16>
    %c2 = arith.constant 2 : index
    %c0_8 = arith.constant 0 : index
    %c0_9 = arith.constant 0 : index
    %14 = vector.load %arg2[%c2, %c0_8, %c0_9] : memref<3x32x128xbf16, #tpu.memory_space<vmem>>, vector<1x32x128xbf16>
    %15 = vector.shape_cast %14 : vector<1x32x128xbf16> to vector<32x128xbf16>
    %cst_10 = arith.constant dense<0.000000e+00> : vector<64x128xf32>
    %16 = tpu.matmul %13, %15, %cst_10 {dimension_numbers = #tpu.dot_dimension_numbers<[1], [0], [0], [1], [0, 0, 1, 1], [], []>} : vector<64x32xbf16>, vector<32x128xbf16>, vector<64x128xf32> -> vector<64x128xf32>
    %17 = arith.addf %11, %16 : vector<64x128xf32>
    %c0_11 = arith.constant 0 : index
    %c0_12 = arith.constant 0 : index
    %18 = vector.load %arg3[%c0_11, %c0_12] : memref<1x128xf32, #tpu.memory_space<vmem>>, vector<1x128xf32>
    %19 = vector.broadcast %18 : vector<1x128xf32> to vector<64x128xf32>
    %20 = arith.addf %17, %19 : vector<64x128xf32>
    %cst_13 = arith.constant 0.000000e+00 : f32
    %21 = vector.broadcast %cst_13 : f32 to vector<64x128xf32>
    %22 = arith.maximumf %20, %21 : vector<64x128xf32>
    %23 = arith.truncf %22 : vector<64x128xf32> to vector<64x128xbf16>
    %c0_14 = arith.constant 0 : index
    %c0_15 = arith.constant 0 : index
    %24 = vector.load %arg4[%c0_14, %c0_15] : memref<128x128xbf16, #tpu.memory_space<vmem>>, vector<128x128xbf16>
    %cst_16 = arith.constant dense<0.000000e+00> : vector<64x128xf32>
    %25 = tpu.matmul %23, %24, %cst_16 {dimension_numbers = #tpu.dot_dimension_numbers<[1], [0], [0], [1], [0, 0, 1, 1], [], []>} : vector<64x128xbf16>, vector<128x128xbf16>, vector<64x128xf32> -> vector<64x128xf32>
    %c0_17 = arith.constant 0 : index
    %c0_18 = arith.constant 0 : index
    %26 = vector.load %arg5[%c0_17, %c0_18] : memref<1x128xf32, #tpu.memory_space<vmem>>, vector<1x128xf32>
    %27 = vector.broadcast %26 : vector<1x128xf32> to vector<64x128xf32>
    %28 = arith.addf %25, %27 : vector<64x128xf32>
    %29 = math.tanh %28 : vector<64x128xf32>
    %c0_19 = arith.constant 0 : index
    %c0_20 = arith.constant 0 : index
    %30 = vector.load %arg6[%c0_19, %c0_20] : memref<1x128xf32, #tpu.memory_space<vmem>>, vector<1x128xf32>
    %31 = vector.broadcast %30 : vector<1x128xf32> to vector<64x128xf32>
    %32 = arith.mulf %29, %31 : vector<64x128xf32>
    %cst_21 = arith.constant dense<0.000000e+00> : vector<64xf32>
    %33 = vector.multi_reduction <add>, %32, %cst_21 [1] : vector<64x128xf32> to vector<64xf32>
    %34 = vector.shape_cast %33 : vector<64xf32> to vector<64x1xf32>
    %35 = vector.shape_cast %34 : vector<64x1xf32> to vector<8x8x1xf32>
    %36 = tpu.iota {dimensions = array<i32: 1>} : vector<8x8x1xi32>
    %c8_i32 = arith.constant 8 : i32
    %37 = vector.broadcast %c8_i32 : i32 to vector<8x8x1xi32>
    %38 = arith.cmpi slt, %36, %37 : vector<8x8x1xi32>
    %cst_22 = arith.constant -1.000000e+30 : f32
    %39 = vector.broadcast %cst_22 : f32 to vector<8x8x1xf32>
    %40 = arith.select %38, %35, %39 : vector<8x8x1xi1>, vector<8x8x1xf32>
    %cst_23 = arith.constant dense<0xFF800000> : vector<8x1xf32>
    %41 = vector.multi_reduction <maximumf>, %40, %cst_23 [1] : vector<8x8x1xf32> to vector<8x1xf32>
    %42 = vector.shape_cast %41 : vector<8x1xf32> to vector<8x1x1xf32>
    %43 = vector.broadcast %42 : vector<8x1x1xf32> to vector<8x8x1xf32>
    %44 = arith.subf %40, %43 : vector<8x8x1xf32>
    %45 = math.exp %44 : vector<8x8x1xf32>
    %cst_24 = arith.constant dense<0.000000e+00> : vector<8x1xf32>
    %46 = vector.multi_reduction <add>, %45, %cst_24 [1] : vector<8x8x1xf32> to vector<8x1xf32>
    %47 = vector.shape_cast %46 : vector<8x1xf32> to vector<8x1x1xf32>
    %48 = vector.broadcast %47 : vector<8x1x1xf32> to vector<8x8x1xf32>
    %49 = arith.divf %45, %48 : vector<8x8x1xf32>
    %50 = vector.shape_cast %22 : vector<64x128xf32> to vector<8x8x128xf32>
    %51 = vector.broadcast %49 : vector<8x8x1xf32> to vector<8x8x128xf32>
    %52 = arith.mulf %51, %50 : vector<8x8x128xf32>
    %cst_25 = arith.constant dense<0.000000e+00> : vector<8x128xf32>
    %53 = vector.multi_reduction <add>, %52, %cst_25 [1] : vector<8x8x128xf32> to vector<8x128xf32>
    %c0_26 = arith.constant 0 : index
    %c0_27 = arith.constant 0 : index
    %54 = vector.load %arg7[%c0_26, %c0_27] : memref<8x128xf32, #tpu.memory_space<vmem>>, vector<8x128xf32>
    tpu.vector_store %arg7[%c0_26, %c0_27], %53 {strides = array<i32>} : memref<8x128xf32, #tpu.memory_space<vmem>>, vector<8x128xf32>,
    return
  }
  func.func @transform_0(%arg0: i32) -> (i32, i32, i32) {
    %c0_i32 = arith.constant 0 : i32
    %c0_i32_0 = arith.constant 0 : i32
    %c0_i32_1 = arith.constant 0 : i32
    return %arg0, %c0_i32, %c0_i32_0 : i32, i32, i32
  }
  func.func @transform_1(%arg0: i32) -> (i32, i32, i32) {
    %c0_i32 = arith.constant 0 : i32
    %c0_i32_0 = arith.constant 0 : i32
    %c0_i32_1 = arith.constant 0 : i32
    %c0_i32_2 = arith.constant 0 : i32
    return %c0_i32, %c0_i32_0, %c0_i32_1 : i32, i32, i32
  }
  func.func @transform_2(%arg0: i32) -> (i32, i32) {
    %c0_i32 = arith.constant 0 : i32
    %c0_i32_0 = arith.constant 0 : i32
    %c0_i32_1 = arith.constant 0 : i32
    return %c0_i32, %c0_i32_0 : i32, i32
  }
  func.func @transform_3(%arg0: i32) -> (i32, i32) {
    %c0_i32 = arith.constant 0 : i32
    %c0_i32_0 = arith.constant 0 : i32
    %c0_i32_1 = arith.constant 0 : i32
    return %c0_i32, %c0_i32_0 : i32, i32
  }
  func.func @transform_4(%arg0: i32) -> (i32, i32) {
    %c0_i32 = arith.constant 0 : i32
    %c0_i32_0 = arith.constant 0 : i32
    %c0_i32_1 = arith.constant 0 : i32
    return %c0_i32, %c0_i32_0 : i32, i32
  }
  func.func @transform_5(%arg0: i32) -> (i32, i32) {
    %c0_i32 = arith.constant 0 : i32
    %c0_i32_0 = arith.constant 0 : i32
    %c0_i32_1 = arith.constant 0 : i32
    return %c0_i32, %c0_i32_0 : i32, i32
  }
  func.func @transform_6(%arg0: i32) -> (i32, i32) {
    %c0_i32 = arith.constant 0 : i32
    %c0_i32_0 = arith.constant 0 : i32
    return %arg0, %c0_i32 : i32, i32
  }
}

</mosaic_0001>

<bundles_post_ra>
// kernel: tpu_custom_call.1
= control target key start
LH: loop header
LB: loop body
LE: loop exit
PB: predicated region body
PF: predicated region fallthrough
CT: control target
= control target key end

     0   :  { %vm45_vm0 = vsmask.f32 3328  ;;  %vm46_vm1 = vsmask.f32 7440  ;;  %vm189_vm2 = vcmask 261120   ;;  %s1611_s0 = inlined_call_operand.vmem [shape: bf16[8,10,32], index: 0, kind: input, shape index: {}]   ;;  %s1612_s1 = inlined_call_operand.vmem [shape: bf16[3,32,128], index: 1, kind: input, shape index: {}]   ;;  %s1613_s2 = inlined_call_operand.vmem [shape: f32[1,128], index: 2, kind: input, shape index: {}]   ;;  %s1614_s3 = inlined_call_operand.vmem [shape: bf16[128,128], index: 3, kind: input, shape index: {}]   ;;  %s1615_s4 = inlined_call_operand.vmem [shape: f32[1,128], index: 4, kind: input, shape index: {}]   ;;  %s1616_s5 = inlined_call_operand.vmem [shape: f32[1,128], index: 5, kind: input, shape index: {}]   ;;  %s1617_s6 = inlined_call_operand.hbm [shape: f32[8,128], index: 6, kind: output, shape index: {}]  }
   0x1   :  { %v1140_v0 = vld [vmem:[%s1612_s1 + $0x10] sm:$0xff]   ;;  %v1141_v1 = vld [vmem:[%s1612_s1 + $0x18] sm:$0xff]   ;;  %v1275_v2 = vld [vmem:[%s1611_s0] sm:$0xf] }
   0x2   :  { %1063 = vmatprep.subr.bf16.mxu0 %v1140_v0  ;;  %v1280_v3 = vld [vmem:[%s1611_s0 + $0x4] sm:$0x1]  ;;  %v1285_v4 = vld [vmem:[%s1611_s0 + $0x8] sm:$0xf]  ;;  %v1290_v5 = vld [vmem:[%s1611_s0 + $0xc] sm:$0x1] }
   0x3   :  { %1064 = vmatpush3.bf16.msra.mxu0 %v1140_v0  ;;  %v49_v6 = vshrl.u32 %v1275_v2, 16  ;;  %v52_v7 = vshll.u32 %v1275_v2, 16  ;;  %v58_v8 = vshll.u32 %v1280_v3, 16  ;;  %v63_v9 = vshrl.u32 %v1285_v4, 16  ;;  %v1301_v16 = vld [vmem:[%s1612_s1] sm:$0xff]   ;;  %vm1328_vm3 = vmor %vm45_vm0, %vm46_vm1  ;;  %v1143_v0 = vld [vmem:[%s1612_s1 + $0x8] sm:$0xff]  }
   0x4   :  { %1065 = vmatprep.subr.bf16.mxu0 %v1141_v1  ;;  %v66_v10 = vshll.u32 %v1285_v4, 16  ;;  %v72_v11 = vshll.u32 %v1290_v5, 16  ;;  %v1306_v19 = vld [vmem:[%s1611_s0 + $0x10] sm:$0xf]  ;;  %v1311_v20 = vld [vmem:[%s1611_s0 + $0x14] sm:$0x1] }
   0x5   :  { %v51_v12 = vrot.slane %v49_v6, 4  ;;  %v54_v13 = vrot.slane %v52_v7, 5  ;;  %v60_v14 = vrot.slane %v58_v8, 5  ;;  %v65_v15 = vrot.slane %v63_v9, 4  ;;  %v1317_v22 = vld [vmem:[%s1611_s0 + $0x18] sm:$0xf] }
   0x6   :  { %v68_v17 = vrot.slane %v66_v10, 5  ;;  %v74_v18 = vrot.slane %v72_v11, 5  ;;  %v1322_v23 = vld [vmem:[%s1611_s0 + $0x1c] sm:$0x1]  ;;  %v77_v24 = vshrl.u32 %v1306_v19, 16  ;;  %v80_v25 = vshll.u32 %v1306_v19, 16 }
   0x7   :  { %1066 = vmatpush3.bf16.msra.mxu0 %v1141_v1  ;;  %v55_v21 = vor.u32 %v54_v13, %v51_v12  ;;  %v86_v28 = vshll.u32 %v1311_v20, 16  ;;  %v91_v29 = vshrl.u32 %v1317_v22, 16  ;;  %v94_v30 = vshll.u32 %v1317_v22, 16  ;;  %v1339_v35 = vld [vmem:[%s1611_s0 + $0x20] sm:$0xf]  ;;  %v1151_v11 = vld [vmem:[%s1614_s3 + $0x8] sm:$0xff]  }
   0x8   :  { %1075 = vmatprep.subr.bf16.mxu0 %v1301_v16  ;;  %v69_v27 = vor.u32 %v68_v17, %v65_v15  ;;  %v79_v32 = vrot.slane %v77_v24, 4  ;;  %v82_v33 = vrot.slane %v80_v25, 5  ;;  %v100_v34 = vshll.u32 %v1322_v23, 16  ;;  %v1344_v40 = vld [vmem:[%s1611_s0 + $0x24] sm:$0x1]  ;;  %v1152_v25 = vld [vmem:[%s1614_s3 + $0x10] sm:$0xff]  }
   0x9   :  { %v56_v31 = vrot.slane %v55_v21, 4  ;;  %v88_v37 = vrot.slane %v86_v28, 5  ;;  %v93_v38 = vrot.slane %v91_v29, 4  ;;  %v96_v39 = vrot.slane %v94_v30, 5  ;;  %v1351_v43 = vld [vmem:[%s1611_s0 + $0x28] sm:$0xf] }
   0xa   :  { %v70_v36 = vrot.slane %v69_v27, 4  ;;  %v83_v42 = vor.u32 %v82_v33, %v79_v32  ;;  %v1356_v44 = vld [vmem:[%s1611_s0 + $0x2c] sm:$0x1]  ;;  %v102_v47 = vrot.slane %v100_v34, 5  ;;  %v105_v48 = vshrl.u32 %v1339_v35, 16  ;;  %v1150_v6 = vld [vmem:[%s1614_s3] sm:$0xff]  }
   0xb   :  { %v61_v41 = vsel %vm1328_vm3, %v56_v31, %v60_v14  ;;  %v97_v46 = vor.u32 %v96_v39, %v93_v38  ;;  %v1364_v49 = vld [vmem:[%s1611_s0 + $0x30] sm:$0xf]  ;;  %v108_v52 = vshll.u32 %v1339_v35, 16  ;;  %v114_v53 = vshll.u32 %v1344_v40, 16  ;;  %v1371_v54 = vld [vmem:[%s1611_s0 + $0x34] sm:$0x1]  ;;  %1099 = vmatprep.subr.bf16.mxu1 %v1150_v6 }
   0xc   :  { %v75_v45 = vsel %vm1328_vm3, %v70_v36, %v74_v18  ;;  %v84_v51 = vrot.slane %v83_v42, 4  ;;  %v107_v56 = vrot.slane %v105_v48, 4  ;;  %v119_v57 = vshrl.u32 %v1351_v43, 16  ;;  %v1378_v59 = vld [vmem:[%s1611_s0 + $0x38] sm:$0xf]  ;;  %1100 = vmatpush3.bf16.msra.mxu1 %v1150_v6  ;;  %v1145_v33 = vld [vmem:[%s1612_s1 + $0x20] sm:$0xff]  }
   0xd   :  { %v980_v50 = vcombine.low %v61_v41, %v75_v45  ;;  %v98_v55 = vrot.slane %v97_v46, 4  ;;  %v122_v58 = vshll.u32 %v1351_v43, 16  ;;  %v110_v61 = vrot.slane %v108_v52, 5  ;;  %v1390_v1 = vld [vmem:[%s1611_s0 + $0x3c] sm:$0x1]  ;;  %1101 = vmatprep.subr.bf16.mxu1 %v1151_v11 }
   0xe   :  { %v89_v60 = vsel %vm1328_vm3, %v84_v51, %v88_v37  ;;  %v116_v62 = vrot.slane %v114_v53, 5  ;;  %v128_v63 = vshll.u32 %v1356_v44, 16  ;;  %v121_v8 = vrot.slane %v119_v57, 4 }
   0xf   :  { %1067 = vmatprep.mubr.msk.bf16.mxu0 %vm189_vm2, %v980_v50  ;;  %v103_v7 = vsel %vm1328_vm3, %v98_v55, %v102_v47  ;;  %v124_v9 = vrot.slane %v122_v58, 5  ;;  %v133_v10 = vshrl.u32 %v1364_v49, 16  ;;  %v111_v13 = vor.u32 %v110_v61, %v107_v56  ;;  %v1154_v50 = vld [vmem:[%s1614_s3 + $0x20] sm:$0xff]  }
  0x10   :  { %v981_v12 = vcombine.low %v89_v60, %v103_v7  ;;  %v130_v14 = vrot.slane %v128_v63, 5  ;;  %v136_v15 = vshll.u32 %v1364_v49, 16  ;;  %v142_v21 = vshll.u32 %v1371_v54, 16  ;;  %1102 = vmatpush3.bf16.msra.mxu1 %v1151_v11 }
  0x11   :  { %v125_v17 = vor.u32 %v124_v9, %v121_v8  ;;  %v135_v18 = vrot.slane %v133_v10, 4  ;;  %v147_v24 = vshrl.u32 %v1378_v59, 16  ;;  %v112_v27 = vrot.slane %v111_v13, 4  ;;  %1103 = vmatprep.subr.bf16.mxu1 %v1152_v25 }
  0x12   :  { %1068 = vmatmul.mubr.msk.bf16.vlgmr.msra.gmra.mrb[0].mxu0 %vm189_vm2, %v981_v12  ;;  %v138_v28 = vrot.slane %v136_v15, 5  ;;  %v150_v29 = vshll.u32 %v1378_v59, 16  ;;  %v156_v30 = vshll.u32 %v1390_v1, 16  ;;  %v144_v37 = vrot.slane %v142_v21, 5 }
  0x13   :  { %1076 = vmatpush3.bf16.msra.mxu0 %v1301_v16  ;;  %v126_v31 = vrot.slane %v125_v17, 4  ;;  %v149_v32 = vrot.slane %v147_v24, 4  ;;  %v117_v34 = vsel %vm1328_vm3, %v112_v27, %v116_v62  ;;  %v1153_v16 = vld [vmem:[%s1614_s3 + $0x18] sm:$0xff]   ;;  %v990_v52 = vcombine.low %v1275_v2, %v1285_v4 }
  0x14   :  { %1077 = vmatprep.subr.bf16.mxu0 %v1143_v0  ;;  %v139_v36 = vor.u32 %v138_v28, %v135_v18  ;;  %v152_v38 = vrot.slane %v150_v29, 5  ;;  %v158_v46 = vrot.slane %v156_v30, 5  ;;  %1104 = vmatpush3.bf16.msra.mxu1 %v1152_v25 }
  0x15   :  { %v131_v39 = vsel %vm1328_vm3, %v126_v31, %v130_v14  ;;  %1105 = vmatprep.subr.bf16.mxu1 %v1153_v16 }
  0x16   :  { %v982_v41 = vcombine.low %v117_v34, %v131_v39  ;;  %v140_v42 = vrot.slane %v139_v36, 4  ;;  %v153_v45 = vor.u32 %v152_v38, %v149_v32 }
  0x17   :  { %1078 = vmatpush3.bf16.msra.mxu0 %v1143_v0 }
  0x18   :  { %1071 = vmatprep.mubr.msk.bf16.mxu0 %vm189_vm2, %v982_v41  ;;  %v145_v47 = vsel %vm1328_vm3, %v140_v42, %v144_v37  ;;  %v154_v48 = vrot.slane %v153_v45, 4  ;;  %1087 = vmatprep.subr.bf16.mxu0 %v1145_v33 }
  0x1a   :  { %v159_v51 = vsel %vm1328_vm3, %v154_v48, %v158_v46 }
  0x1b   :  { %v983_v53 = vcombine.low %v145_v47, %v159_v51 }
  0x1c   :  { %11 = vsyncpa [#allocation3], 0  ;;  %1106 = vmatpush3.bf16.msra.mxu1 %v1153_v16  ;;  %v1155_v55 = vld [vmem:[%s1614_s3 + $0x28] sm:$0xff]   ;;  %v991_v26 = vcombine.low %v1306_v19, %v1317_v22  ;;  %vm384_vm4 = vcmask 1042432   ;;  %vm385_vm5 = vcmask 1046532   ;;  %v992_v56 = vcombine.low %v1339_v35, %v1351_v43 }
  0x1d   :  { %1072 = vmatmul.mubr.msk.bf16.gmra.mrb[4].mxu0 %vm189_vm2, %v983_v53  ;;  %1107 = vmatprep.subr.bf16.mxu1 %v1154_v50  ;;  %v389_v57 = vrot.slane %v1280_v3, 5  ;;  %v393_v58 = vrot.slane %v1290_v5, 5  ;;  %v1148_v60 = vld [vmem:[%s1612_s1 + $0x28] sm:$0xff]   ;;  %v1000_v61 = vrot.slane %v1275_v2, 9  ;;  %v1001_v62 = vrot.slane %v1285_v4, 9  ;;  %vm1447_vm6 = vmor %vm384_vm4, %vm385_vm5 }
  0x1e   :  { %1079 = vmatprep.mubr.msk.bf16.mxu0 %vm189_vm2, %v990_v52  ;;  %v397_v2 = vrot.slane %v1311_v20, 5  ;;  %v993_v4 = vcombine.low %v1364_v49, %v1378_v59  ;;  %v401_v0 = vrot.slane %v1322_v23, 5  ;;  %v1002_v7 = vrot.slane %v1306_v19, 9 }
  0x1f   :  { %v390_v3 = vsel %vm1447_vm6, %v1000_v61, %v389_v57  ;;  %v394_v5 = vsel %vm1447_vm6, %v1001_v62, %v393_v58  ;;  %v1003_v8 = vrot.slane %v1317_v22, 9  ;;  %v1004_v9 = vrot.slane %v1339_v35, 9 }
  0x20   :  { %1108 = vmatpush3.bf16.msra.mxu1 %v1154_v50  ;;  %v1012_v6 = vcombine.low %v390_v3, %v394_v5  ;;  %v405_v10 = vrot.slane %v1344_v40, 5  ;;  %v1005_v11 = vrot.slane %v1351_v43, 9  ;;  %v409_v12 = vrot.slane %v1356_v44, 5 }
  0x21   :  { %1109 = vmatprep.subr.bf16.mxu1 %v1155_v55  ;;  %v398_v20 = vsel %vm1447_vm6, %v1002_v7, %v397_v2  ;;  %v402_v19 = vsel %vm1447_vm6, %v1003_v8, %v401_v0  ;;  %v1006_v40 = vrot.slane %v1364_v49, 9  ;;  %v413_v44 = vrot.slane %v1371_v54, 5  ;;  %v1156_v49 = vld [vmem:[%s1614_s3 + $0x30] sm:$0xff]   ;;  %v1157_v54 = vld [vmem:[%s1614_s3 + $0x38] sm:$0xff]   ;;  %v1032_v8 = vld [vmem:[%s1616_s5] ss:$0 sm:$0xff] }
  0x22   :  { %v406_v22 = vsel %vm1447_vm6, %v1004_v9, %v405_v10  ;;  %v410_v23 = vsel %vm1447_vm6, %v1005_v11, %v409_v12  ;;  %v1013_v35 = vcombine.low %v398_v20, %v402_v19  ;;  %v1007_v13 = vrot.slane %v1378_v59, 9  ;;  %v1022_v59 = vld [vmem:[%s1613_s2] ss:$0 sm:$0xff]  ;;  %s1230_s5 = smov [#allocation2]  }
  0x23   :  { %v1014_v43 = vcombine.low %v406_v22, %v410_v23  ;;  %v417_v14 = vrot.slane %v1390_v1, 5  ;;  %v414_v15 = vsel %vm1447_vm6, %v1006_v40, %v413_v44  ;;  %vm946_vm7 = vcmask 1041409   ;;  %s968_s10 = sshll.u32 %s1230_s5, 4  ;;  %s969_s10 = int_to_ptr.vmem [resolvable:$true] %s968_s10 }
  0x24   :  { %1110 = vmatpush3.bf16.msra.mxu1 %v1155_v55  ;;  %vm948_vm8 = vcmask 1042434   ;;  %vm950_vm9 = vcmask 1043459   ;;  %vm952_vm10 = vcmask 1044484   ;;  %vm954_vm11 = vcmask 1045509   ;;  %s1206_s11 = scalar_lea.vmem %s969_s10, 128  ;;  %p1211_p1 = scmp.lt.s32.totalorder %s969_s10, %s969_s10 }
  0x25   :  { %1080 = vmatmul.mubr.msk.bf16.vlgmr.msra.gmra.mrb[0].mxu0 %vm189_vm2, %v991_v26  ;;  %v418_v17 = vsel %vm1447_vm6, %v1007_v13, %v417_v14  ;;  %1111 = vmatprep.subr.bf16.mxu1 %v1156_v49  ;;  %v1023_v26 = vld [vmem:[%s1615_s4] ss:$0 sm:$0xff]  ;;  %vm956_vm12 = vcmask 1046534   ;;  %vm958_vm13 = vcmask 1047559   ;;  %p1207_p0 = scmp.ne.s32.totalorder %s969_s10, %s1206_s11  ;;  %p1212_p2 = scmp.lt.s32.totalorder %s1206_s11, %s1206_s11 }
  0x26   :  { %1088 = vmatpush3.bf16.msra.mxu0 %v1145_v33  ;;  %1083 = vmatprep.mubr.msk.bf16.mxu0 %vm189_vm2, %v992_v56  ;;  %v1015_v18 = vcombine.low %v414_v15, %v418_v17 }
  0x27   :  { %1089 = vmatprep.subr.bf16.mxu0 %v1148_v60  ;;  %p1213_p3 = por %p1212_p2, %p1211_p1 }
  0x28   :  { %1112 = vmatpush3.bf16.msra.mxu1 %v1156_v49 }
  0x29   :  { %1113 = vmatprep.subr.bf16.mxu1 %v1157_v54  ;;  %p1214_p4 = pnand %p1213_p3, %p1207_p0 }
  0x2a   :  { %1090 = vmatpush3.bf16.msra.mxu0 %v1148_v60 }
  0x2c   :  { %1114 = vmatpush3.bf16.msra.mxu1 %v1157_v54 }
  0x2d   :  { %1084 = vmatmul.mubr.msk.bf16.gmra.mrb[4].mxu0 %vm189_vm2, %v993_v4 }
  0x2e   :  { %1091 = vmatprep.mubr.msk.bf16.mxu0 %vm189_vm2, %v1012_v6 }
  0x35   :  { %1092 = vmatmul.mubr.msk.bf16.vlgmr.msra.gmra.mrb[0].mxu0 %vm189_vm2, %v1013_v35 }
  0x36   :  { %1095 = vmatprep.mubr.msk.bf16.mxu0 %vm189_vm2, %v1014_v43 }
  0x3d   :  { %1096 = vmatmul.mubr.msk.bf16.gmra.mrb[4].mxu0 %vm189_vm2, %v1015_v18 }
 0x108   :  { %v1093_v1 = vpop.f32.mrb[0].mxu0 }
 0x109   :  { %v494_v21 = vpop.f32.mrb[1].mxu0  ;;  %v1499_v27 = vadd.f32 %v1093_v1, %v1022_v59 }
 0x10a   :  { %v1497_v24 = vadd.f32 %v1022_v59, %v494_v21  ;;  %v1094_v25 = vpop.f32.mrb[2].mxu0 }
 0x10b   :  { %v1501_v28 = vadd.f32 %v1094_v25, %v1022_v59  ;;  %v497_v29 = vpop.f32.mrb[3].mxu0  ;;  %v550_v34 = vmax.f32 %v1499_v27, 0.0 }
 0x10c   :  { %v1503_v30 = vadd.f32 %v1022_v59, %v497_v29  ;;  %v548_v32 = vmax.f32 %v1497_v24, 0.0 }
 0x10d   :  { %v551_v31 = vmax.f32 %v1501_v28, 0.0 }
 0x10e   :  { %v549_v33 = vmax.f32 %v1503_v30, 0.0 }
 0x10f   :  { %v557_v38 = vpack.c.bf16 %v551_v31, %v550_v34 }
 0x110   :  { %v1097_v36 = vpop.f32.mrb[4].mxu0  ;;  %v556_v37 = vpack.c.bf16 %v549_v33, %v548_v32 }
 0x111   :  { %v510_v39 = vpop.f32.mrb[5].mxu0  ;;  %v1519_v42 = vadd.f32 %v1097_v36, %v1022_v59 }
 0x112   :  { %v1517_v16 = vadd.f32 %v1022_v59, %v510_v39  ;;  %v1098_v41 = vpop.f32.mrb[6].mxu0  ;;  %1115 = vmatprep.mubr.bf16.mxu1 %v556_v37 }
 0x113   :  { %v1521_v45 = vadd.f32 %v1098_v41, %v1022_v59  ;;  %v513_v46 = vpop.f32.mrb[7].mxu0  ;;  %1116 = vmatmul.mubr.bf16.vlgmr.msra.gmra.mrb[0].mxu1 %v557_v38  ;;  %v554_v52 = vmax.f32 %v1519_v42, 0.0 }
 0x114   :  { %v1523_v47 = vadd.f32 %v1022_v59, %v513_v46  ;;  %v552_v50 = vmax.f32 %v1517_v16, 0.0 }
 0x115   :  { %v555_v48 = vmax.f32 %v1521_v45, 0.0 }
 0x116   :  { %v553_v51 = vmax.f32 %v1523_v47, 0.0 }
 0x117   :  { %v559_v55 = vpack.c.bf16 %v555_v48, %v554_v52 }
 0x118   :  { %v558_v53 = vpack.c.bf16 %v553_v51, %v552_v50 }
 0x11a   :  { %1119 = vmatprep.mubr.bf16.mxu1 %v558_v53 }
 0x11b   :  { %1120 = vmatmul.mubr.bf16.gmra.mrb[4].mxu1 %v559_v55 }
 0x1e6   :  { %v1117_v56 = vpop.f32.mrb[0].mxu1 }
 0x1e7   :  { %v674_v57 = vadd.f32 %v1117_v56, %v1023_v26  ;;  %v665_v58 = vpop.f32.mrb[1].mxu1 }
 0x1e8   :  { %v666_v60 = vadd.f32 %v1023_v26, %v665_v58  ;;  %v1118_v61 = vpop.f32.mrb[2].mxu1 }
 0x1e9   :  { %1158 = vtanh.f32 %v674_v57  ;;  %v677_v62 = vadd.f32 %v1118_v61, %v1023_v26  ;;  %v668_v63 = vpop.f32.mrb[3].mxu1 }
 0x1ea   :  { %1160 = vtanh.f32 %v666_v60  ;;  %v669_v3 = vadd.f32 %v1023_v26, %v668_v63 }
 0x1eb   :  { %1162 = vtanh.f32 %v677_v62 }
 0x1ec   :  { %1164 = vtanh.f32 %v669_v3 }
 0x1ee   :  { %v1121_v5 = vpop.f32.mrb[4].mxu1 }
 0x1ef   :  { %v690_v2 = vadd.f32 %v1121_v5, %v1023_v26  ;;  %v681_v4 = vpop.f32.mrb[5].mxu1 }
 0x1f0   :  { %v682_v0 = vadd.f32 %v1023_v26, %v681_v4  ;;  %v1122_v6 = vpop.f32.mrb[6].mxu1 }
 0x1f1   :  { %v684_v7 = vpop.f32.mrb[7].mxu1  ;;  %v693_v9 = vadd.f32 %v1122_v6, %v1023_v26 }
 0x1f2   :  { %1166 = vtanh.f32 %v682_v0  ;;  %v685_v10 = vadd.f32 %v1023_v26, %v684_v7 }
 0x1f3   :  { %v1159_v11 = vpop.eup %1158  ;;  %1168 = vtanh.f32 %v690_v2 }
 0x1f4   :  { %v1161_v12 = vpop.eup %1160  ;;  %1170 = vtanh.f32 %v685_v10  ;;  %v713_v20 = vmul.f32 %v1159_v11, %v1032_v8 }
 0x1f5   :  { %v1163_v19 = vpop.eup %1162  ;;  %v711_v22 = vmul.f32 %v1161_v12, %v1032_v8  ;;  %1172 = vtanh.f32 %v693_v9 }
 0x1f6   :  { %v1165_v23 = vpop.eup %1164  ;;  %723 = vadd.xlane.f32.xlu1 %v713_v20  ;;  %v714_v35 = vmul.f32 %v1163_v19, %v1032_v8 }
 0x1f7   :  { %719 = vadd.xlane.f32.xlu0 %v711_v22  ;;  %v712_v40 = vmul.f32 %v1165_v23, %v1032_v8 }
 0x1fa   :  { %725 = vadd.xlane.f32.xlu1 %v714_v35 }
 0x1fb   :  { %721 = vadd.xlane.f32.xlu0 %v712_v40 }
 0x1fc   :  { %v1167_v43 = vpop.eup %1166 }
 0x1fd   :  { %v1169_v44 = vpop.eup %1168  ;;  %v715_v13 = vmul.f32 %v1167_v43, %v1032_v8 }
 0x1fe   :  { %v1171_v14 = vpop.eup %1170  ;;  %v717_v18 = vmul.f32 %v1169_v44, %v1032_v8 }
 0x1ff   :  { %727 = vadd.xlane.f32.xlu0 %v715_v13  ;;  %v716_v15 = vmul.f32 %v1171_v14, %v1032_v8  ;;  %v1173_v17 = vpop.eup %1172 }
 0x200   :  { %v718_v49 = vmul.f32 %v1173_v17, %v1032_v8 }
 0x201   :  { %729 = vadd.xlane.f32.xlu1 %v716_v15 }
 0x203   :  { %731 = vadd.xlane.f32.xlu0 %v717_v18 }
 0x205   :  { %733 = vadd.xlane.f32.xlu1 %v718_v49 }
 0x283   :  { %v724_v54 = vpop.xlane.xlu1 %723 }
 0x284   :  { %v758_v59 = vrot.slane %v724_v54, 4  ;;  %v720_v1 = vpop.xlane.xlu0 %719 }
 0x285   :  { %v746_v21 = vrot.slane %v720_v1, 4 }
 0x286   :  { %v759_v25 = vmax.f32 %v724_v54, %v758_v59 }
 0x287   :  { %v747_v29 = vmax.f32 %v720_v1, %v746_v21  ;;  %v726_v36 = vpop.xlane.xlu1 %725 }
 0x288   :  { %v760_v37 = vrot.slane %v759_v25, 2  ;;  %v764_v38 = vrot.slane %v726_v36, 4  ;;  %v722_v39 = vpop.xlane.xlu0 %721 }
 0x289   :  { %v748_v41 = vrot.slane %v747_v29, 2  ;;  %v752_v46 = vrot.slane %v722_v39, 4 }
 0x28a   :  { %v761_v53 = vmax.f32 %v759_v25, %v760_v37  ;;  %v765_v55 = vmax.f32 %v726_v36, %v764_v38 }
 0x28b   :  { %v749_v26 = vmax.f32 %v747_v29, %v748_v41  ;;  %v753_v56 = vmax.f32 %v722_v39, %v752_v46 }
 0x28c   :  { %v762_v57 = vrot.slane %v761_v53, 1  ;;  %v766_v58 = vrot.slane %v765_v55, 2  ;;  %v728_v60 = vpop.xlane.xlu0 %727 }
 0x28d   :  { %v750_v61 = vrot.slane %v749_v26, 1  ;;  %v754_v62 = vrot.slane %v753_v56, 2  ;;  %v770_v63 = vrot.slane %v728_v60, 4 }
 0x28e   :  { %v763_v3 = vmax.f32 %v761_v53, %v762_v57  ;;  %v767_v5 = vmax.f32 %v765_v55, %v766_v58  ;;  %v730_v2 = vpop.xlane.xlu1 %729 }
 0x28f   :  { %v751_v4 = vmax.f32 %v749_v26, %v750_v61  ;;  %v755_v0 = vmax.f32 %v753_v56, %v754_v62  ;;  %v771_v6 = vmax.f32 %v728_v60, %v770_v63  ;;  %v776_v7 = vrot.slane %v730_v2, 4 }
 0x290   :  { %v796_v8 = vsub.f32 %v724_v54, %v763_v3  ;;  %v768_v9 = vrot.slane %v767_v5, 1  ;;  %v732_v10 = vpop.xlane.xlu0 %731 }
 0x291   :  { %v794_v11 = vsub.f32 %v720_v1, %v751_v4  ;;  %v756_v12 = vrot.slane %v755_v0, 1  ;;  %v772_v20 = vrot.slane %v771_v6, 2  ;;  %v777_v19 = vmax.f32 %v730_v2, %v776_v7 }
 0x292   :  { %v806_v22 = vmul.f32 1.442695, %v796_v8  ;;  %v769_v23 = vmax.f32 %v767_v5, %v768_v9  ;;  %v782_v35 = vrot.slane %v732_v10, 4  ;;  %v734_v40 = vpop.xlane.xlu1 %733 }
 0x293   :  { %v802_v43 = vmul.f32 1.442695, %v794_v11  ;;  %v757_v44 = vmax.f32 %v755_v0, %v756_v12  ;;  %v773_v13 = vmax.f32 %v771_v6, %v772_v20  ;;  %v778_v14 = vrot.slane %v777_v19, 2 }
 0x294   :  { %1174 = vpow2.f32 %v806_v22  ;;  %v797_v15 = vsub.f32 %v726_v36, %v769_v23  ;;  %v783_v17 = vmax.f32 %v732_v10, %v782_v35  ;;  %v788_v18 = vrot.slane %v734_v40, 4 }
 0x295   :  { %1176 = vpow2.f32 %v802_v43  ;;  %v795_v49 = vsub.f32 %v722_v39, %v757_v44  ;;  %v774_v54 = vrot.slane %v773_v13, 1  ;;  %v779_v59 = vmax.f32 %v777_v19, %v778_v14 }
 0x296   :  { %v808_v1 = vmul.f32 1.442695, %v797_v15  ;;  %v784_v21 = vrot.slane %v783_v17, 2  ;;  %v789_v25 = vmax.f32 %v734_v40, %v788_v18 }
 0x297   :  { %v804_v29 = vmul.f32 1.442695, %v795_v49  ;;  %v775_v37 = vmax.f32 %v773_v13, %v774_v54  ;;  %v780_v38 = vrot.slane %v779_v59, 1 }
 0x298   :  { %1178 = vpow2.f32 %v808_v1  ;;  %v785_v41 = vmax.f32 %v783_v17, %v784_v21  ;;  %v790_v46 = vrot.slane %v789_v25, 2 }
 0x299   :  { %1180 = vpow2.f32 %v804_v29  ;;  %v798_v53 = vsub.f32 %v728_v60, %v775_v37  ;;  %v781_v55 = vmax.f32 %v779_v59, %v780_v38 }
 0x29a   :  { %v786_v26 = vrot.slane %v785_v41, 1  ;;  %v791_v36 = vmax.f32 %v789_v25, %v790_v46 }
 0x29b   :  { %v810_v56 = vmul.f32 1.442695, %v798_v53  ;;  %v799_v57 = vsub.f32 %v730_v2, %v781_v55 }
 0x29c   :  { %v787_v58 = vmax.f32 %v785_v41, %v786_v26  ;;  %v792_v39 = vrot.slane %v791_v36, 1 }
 0x29d   :  { %1182 = vpow2.f32 %v810_v56  ;;  %v812_v61 = vmul.f32 1.442695, %v799_v57 }
 0x29e   :  { %v1543_v62 = vpop.eup %1174  ;;  %v800_v63 = vsub.f32 %v732_v10, %v787_v58  ;;  %v793_v3 = vmax.f32 %v791_v36, %v792_v39 }
 0x29f   :  { %v1545_v5 = vpop.eup %1176  ;;  %v830_v4 = vrot.slane %v1543_v62, 4  ;;  %1184 = vpow2.f32 %v812_v61 }
 0x2a0   :  { %v818_v60 = vrot.slane %v1545_v5, 4  ;;  %v814_v0 = vmul.f32 1.442695, %v800_v63  ;;  %v801_v6 = vsub.f32 %v734_v40, %v793_v3 }
 0x2a1   :  { %v831_v7 = vadd.f32 %v1543_v62, %v830_v4 }
 0x2a2   :  { %v1550_v2 = vpop.eup %1178  ;;  %v819_v8 = vadd.f32 %v1545_v5, %v818_v60  ;;  %1186 = vpow2.f32 %v814_v0  ;;  %v816_v9 = vmul.f32 1.442695, %v801_v6 }
 0x2a3   :  { %v1553_v11 = vpop.eup %1180  ;;  %v832_v10 = vrot.slane %v831_v7, 2  ;;  %v836_v12 = vrot.slane %v1550_v2, 4 }
 0x2a4   :  { %v820_v20 = vrot.slane %v819_v8, 2  ;;  %v824_v19 = vrot.slane %v1553_v11, 4  ;;  %1188 = vpow2.f32 %v816_v9 }
 0x2a5   :  { %v833_v22 = vadd.f32 %v832_v10, %v831_v7  ;;  %v837_v23 = vadd.f32 %v1550_v2, %v836_v12 }
 0x2a6   :  { %v821_v35 = vadd.f32 %v820_v20, %v819_v8  ;;  %v825_v40 = vadd.f32 %v1553_v11, %v824_v19 }
 0x2a7   :  { %v1559_v43 = vpop.eup %1182  ;;  %v834_v44 = vrot.slane %v833_v22, 1  ;;  %v838_v13 = vrot.slane %v837_v23, 2 }
 0x2a8   :  { %v822_v14 = vrot.slane %v821_v35, 1  ;;  %v826_v15 = vrot.slane %v825_v40, 2  ;;  %v842_v17 = vrot.slane %v1559_v43, 4 }
 0x2a9   :  { %v1562_v18 = vpop.eup %1184  ;;  %v835_v49 = vadd.f32 %v834_v44, %v833_v22  ;;  %v839_v54 = vadd.f32 %v838_v13, %v837_v23 }
 0x2aa   :  { %v823_v59 = vadd.f32 %v822_v14, %v821_v35  ;;  %v827_v1 = vadd.f32 %v826_v15, %v825_v40  ;;  %v843_v21 = vadd.f32 %v1559_v43, %v842_v17  ;;  %v848_v25 = vrot.slane %v1562_v18, 4 }
 0x2ab   :  { %1190 = vrcp.f32 %v835_v49  ;;  %v840_v29 = vrot.slane %v839_v54, 1 }
 0x2ac   :  { %v1566_v37 = vpop.eup %1186  ;;  %1192 = vrcp.f32 %v823_v59  ;;  %v828_v38 = vrot.slane %v827_v1, 1  ;;  %v844_v41 = vrot.slane %v843_v21, 2  ;;  %v849_v46 = vadd.f32 %v1562_v18, %v848_v25 }
 0x2ad   :  { %v841_v53 = vadd.f32 %v840_v29, %v839_v54  ;;  %v854_v55 = vrot.slane %v1566_v37, 4 }
 0x2ae   :  { %v1570_v26 = vpop.eup %1188  ;;  %v829_v36 = vadd.f32 %v828_v38, %v827_v1  ;;  %v845_v56 = vadd.f32 %v844_v41, %v843_v21  ;;  %v850_v57 = vrot.slane %v849_v46, 2 }
 0x2af   :  { %1194 = vrcp.f32 %v841_v53  ;;  %v855_v58 = vadd.f32 %v1566_v37, %v854_v55  ;;  %v860_v39 = vrot.slane %v1570_v26, 4 }
 0x2b0   :  { %1196 = vrcp.f32 %v829_v36  ;;  %v846_v61 = vrot.slane %v845_v56, 1  ;;  %v851_v63 = vadd.f32 %v850_v57, %v849_v46 }
 0x2b1   :  { %v856_v3 = vrot.slane %v855_v58, 2  ;;  %v861_v4 = vadd.f32 %v1570_v26, %v860_v39 }
 0x2b2   :  { %v847_v60 = vadd.f32 %v846_v61, %v845_v56  ;;  %v852_v0 = vrot.slane %v851_v63, 1 }
 0x2b3   :  { %v857_v6 = vadd.f32 %v856_v3, %v855_v58  ;;  %v862_v7 = vrot.slane %v861_v4, 2 }
 0x2b4   :  { %v853_v8 = vadd.f32 %v852_v0, %v851_v63  ;;  %1198 = vrcp.f32 %v847_v60 }
 0x2b5   :  { %v1191_v9 = vpop.eup %1190  ;;  %v858_v10 = vrot.slane %v857_v6, 1  ;;  %v863_v12 = vadd.f32 %v862_v7, %v861_v4 }
 0x2b6   :  { %v1193_v20 = vpop.eup %1192  ;;  %v871_v19 = vmul.f32 %v1191_v9, %v1543_v62  ;;  %1200 = vrcp.f32 %v853_v8 }
 0x2b7   :  { %v859_v22 = vadd.f32 %v858_v10, %v857_v6  ;;  %v864_v23 = vrot.slane %v863_v12, 1  ;;  %v867_v35 = vmul.f32 %v1193_v20, %v1545_v5 }
 0x2b8   :  { %v884_v40 = vmul.f32 %v871_v19, %v550_v34 }
 0x2b9   :  { %v1195_v44 = vpop.eup %1194  ;;  %v865_v13 = vadd.f32 %v864_v23, %v863_v12  ;;  %1202 = vrcp.f32 %v859_v22  ;;  %v882_v14 = vmul.f32 %v867_v35, %v548_v32 }
 0x2ba   :  { %v1197_v15 = vpop.eup %1196  ;;  %v873_v17 = vmul.f32 %v1195_v44, %v1550_v2  ;;  %v902_v49 = vrot.slane %v884_v40, 4 }
 0x2bb   :  { %v869_v62 = vmul.f32 %v1197_v15, %v1553_v11  ;;  %1204 = vrcp.f32 %v865_v13  ;;  %v890_v54 = vrot.slane %v882_v14, 4 }
 0x2bc   :  { %v885_v5 = vmul.f32 %v873_v17, %v551_v31  ;;  %v903_v59 = vadd.f32 %v902_v49, %v884_v40 }
 0x2bd   :  { %v883_v27 = vmul.f32 %v869_v62, %v549_v33  ;;  %v891_v34 = vadd.f32 %v890_v54, %v882_v14 }
 0x2be   :  { %v1199_v1 = vpop.eup %1198  ;;  %v904_v21 = vrot.slane %v903_v59, 2  ;;  %v908_v24 = vrot.slane %v885_v5, 4 }
 0x2bf   :  { %v875_v32 = vmul.f32 %v1199_v1, %v1559_v43  ;;  %v892_v25 = vrot.slane %v891_v34, 2  ;;  %v896_v2 = vrot.slane %v883_v27, 4 }
 0x2c0   :  { %v1201_v29 = vpop.eup %1200  ;;  %v909_v38 = vadd.f32 %v908_v24, %v885_v5  ;;  %v905_v46 = vadd.f32 %v904_v21, %v903_v59 }
 0x2c1   :  { %v877_v11 = vmul.f32 %v1201_v29, %v1562_v18  ;;  %v886_v28 = vmul.f32 %v875_v32, %v552_v50  ;;  %v893_v31 = vadd.f32 %v892_v25, %v891_v34  ;;  %v897_v41 = vadd.f32 %v896_v2, %v883_v27 }
 0x2c2   :  { %v910_v30 = vrot.slane %v909_v38, 2  ;;  %v906_v63 = vrot.slane %v905_v46, 1 }
 0x2c3   :  { %v1203_v33 = vpop.eup %1202  ;;  %v887_v53 = vmul.f32 %v877_v11, %v553_v51  ;;  %v898_v55 = vrot.slane %v897_v41, 2  ;;  %v914_v36 = vrot.slane %v886_v28, 4  ;;  %v894_v58 = vrot.slane %v893_v31, 1 }
 0x2c4   :  { %v879_v43 = vmul.f32 %v1203_v33, %v1566_v37  ;;  %v911_v56 = vadd.f32 %v910_v30, %v909_v38  ;;  %v907_v9 = vadd.f32 %v906_v63, %v905_v46 }
 0x2c5   :  { %v1205_v57 = vpop.eup %1204  ;;  %v899_v39 = vadd.f32 %v898_v55, %v897_v41  ;;  %v915_v18 = vadd.f32 %v914_v36, %v886_v28  ;;  %v920_v61 = vrot.slane %v887_v53, 4  ;;  %v895_v0 = vadd.f32 %v894_v58, %v893_v31 }
 0x2c6   :  { %v881_v16 = vmul.f32 %v1205_v57, %v1570_v26  ;;  %v888_v50 = vmul.f32 %v879_v43, %v554_v52  ;;  %v912_v4 = vrot.slane %v911_v56, 1 }
 0x2c7   :  { %v900_v3 = vrot.slane %v899_v39, 1  ;;  %v916_v47 = vrot.slane %v915_v18, 2  ;;  %v921_v51 = vadd.f32 %v920_v61, %v887_v53 }
 0x2c8   :  { %v889_v60 = vmul.f32 %v881_v16, %v555_v48  ;;  %v926_v37 = vrot.slane %v888_v50, 4  ;;  %v913_v42 = vadd.f32 %v912_v4, %v911_v56 }
 0x2c9   :  { %v901_v6 = vadd.f32 %v900_v3, %v899_v39  ;;  %v917_v7 = vadd.f32 %v916_v47, %v915_v18  ;;  %v922_v8 = vrot.slane %v921_v51, 2 }
 0x2ca   :  { %v927_v26 = vadd.f32 %v926_v37, %v888_v50  ;;  %v932_v10 = vrot.slane %v889_v60, 4 }
 0x2cb   :  { %v918_v52 = vrot.slane %v917_v7, 1  ;;  %v923_v12 = vadd.f32 %v922_v8, %v921_v51  ;;  %v947_v20 = vsel %vm946_vm7, %v901_v6, %v895_v0 }
 0x2cc   :  { %v928_v19 = vrot.slane %v927_v26, 2  ;;  %v933_v22 = vadd.f32 %v932_v10, %v889_v60  ;;  %v949_v23 = vsel %vm948_vm8, %v907_v9, %v947_v20 }
 0x2cd   :  { %v919_v45 = vadd.f32 %v918_v52, %v917_v7  ;;  %v924_v48 = vrot.slane %v923_v12, 1  ;;  %v951_v35 = vsel %vm950_vm9, %v913_v42, %v949_v23 }
 0x2ce   :  { %v929_v40 = vadd.f32 %v928_v19, %v927_v26  ;;  %v934_v44 = vrot.slane %v933_v22, 2 }
 0x2cf   :  { %v925_v13 = vadd.f32 %v924_v48, %v923_v12  ;;  %v953_v14 = vsel %vm952_vm10, %v919_v45, %v951_v35 }
 0x2d0   :  { %v930_v15 = vrot.slane %v929_v40, 1  ;;  %v935_v17 = vadd.f32 %v934_v44, %v933_v22 }
 0x2d1   :  { %v955_v49 = vsel %vm954_vm11, %v925_v13, %v953_v14 }
 0x2d2   :  { %v931_v62 = vadd.f32 %v930_v15, %v929_v40  ;;  %v936_v54 = vrot.slane %v935_v17, 1 }
 0x2d4   :  { %v937_v5 = vadd.f32 %v936_v54, %v935_v17  ;;  %v957_v59 = vsel %vm956_vm12, %v931_v62, %v955_v49 }
 0x2d6   :  { %v959_v27 = vsel %vm958_vm13, %v937_v5, %v957_v59 }
 0x2d7   :  { %961 = vst [vmem:[#allocation2] sm:$0xff] %v959_v27 }
 0x2d8   :  { %1217 = shalt.err (!%p1214_p4)
}
 0x2d9   :  { %s1218_s14 = scalar_lea.hbm %s1617_s6, 128 }
 0x2da   :  { %p1219_p5 = scmp.ne.s32.totalorder %s1617_s6, %s1218_s14  ;;  %p1222_p6 = scmp.lt.u32.totalorder %s1218_s14, %s1617_s6 }
 0x2dc   :  { %p1224_p7 = pnand %p1222_p6, %p1219_p5 }
 0x2de   :  { %1227 = shalt.err (!%p1224_p7)
}
 0x2df   :  { %971 = dma.vmem_to_hbm [thread:$0]  %s969_s10, 128, %s1617_s6, [#allocation3]  }
 0x2e0   :  { %1228 = dma.done.wait [#allocation3], 128  }
 0x2e1   :  { %1229 = vsyncadd [#allocation3], 4294967168 }
 0x2e2   :  { %975 = vsyncpa [#allocation3], 1 }

</bundles_post_ra>
